<compile_context>
chip_gen: v6e
topology: v6e:2x2x1
jax: 0.10.0
libtpu: 0.0.40
codegen_flags: <defaults>
</compile_context>

<pallas_src>
import jax
import jax.numpy as jnp
from jax.experimental import pallas as pl
from jax.experimental.pallas import tpu as pltpu


EXPECTED_DTYPE = jnp.bfloat16   # the "mixed precision" dtype the module asserts on
IN_FEATURES = 32
OUT_FEATURES = 2
PACK = 4                        # 4 batch rows of 32 features per 128-lane row
PACKED_K = PACK * IN_FEATURES   # 128
PACKED_M = PACK * OUT_FEATURES  # 8
DEFAULT_TILE_B = 65536          # 16384 packed rows -> 4 MiB x-buffer (x2 bufs = 8 MiB)


def _packed_linear_kernel(x_ref, w_ref, b_ref, o_ref):
    # x_ref: (TILE_P, 128) bf16   -- 4 batch rows packed per 128-lane row
    # w_ref: (8, 128)      bf16   -- block-diagonal: 4 copies of W(2,32)
    # b_ref: (8, 1)        bf16   -- bias tiled 4x
    # o_ref: (8, TILE_P)   bf16   -- lane-dense packed output
    #
    # out[m, p] = sum_k w_pack[m, k] * x_pack[p, k]   (QK^T-style contraction,
    # both operands contracted on their last dim -> no XLU transpose of x).
    acc = jax.lax.dot_general(
        w_ref[...],
        x_ref[...],
        dimension_numbers=(((1,), (1,)), ((), ())),
        preferred_element_type=jnp.float32,
    )  # (8, TILE_P), f32 accumulation on the MXU
    acc = acc + b_ref[...].astype(jnp.float32)   # f32 epilogue (v5e has no bf16 VPU)
    o_ref[...] = acc.astype(o_ref.dtype)


def mixed_precision_linear(x, weight, bias, tile_b=DEFAULT_TILE_B):
    """Pallas equivalent of MixedPrecisionModule.forward.

    x:      (B, 32) with dtype == EXPECTED_DTYPE (matches the module's assert)
    weight: (2, 32)  (native PyTorch nn.Linear layout)
    bias:   (2,)
    returns (B, 2) in EXPECTED_DTYPE
    """
    assert x.dtype == EXPECTED_DTYPE, f"expected {EXPECTED_DTYPE}, got {x.dtype}"
    B = x.shape[0]
    assert x.shape[1] == IN_FEATURES

    # --- pack 4 batch rows per 128-lane row (free contiguous reshape) -------
    if B % PACK != 0:
        # TODO(synk): for huge ragged B, pad only the tail rows instead of
        # materializing a padded copy of all of x.
        x = jnp.pad(x, ((0, PACK - B % PACK), (0, 0)))
    P = x.shape[0] // PACK
    x_packed = x.reshape(P, PACKED_K)                       # (P, 128)

    # --- module parameters in the mixed-precision dtype ---------------------
    # (fused under the caller's jit; folded to constants when params are static)
    w_bf = weight.astype(EXPECTED_DTYPE)                    # (2, 32)
    # Block-diagonal packed weight: w_pack[2j+o, 32j+k] = W[o, k]
    w_pack = jnp.kron(jnp.eye(PACK, dtype=EXPECTED_DTYPE), w_bf)       # (8, 128)
    b_pack = jnp.tile(bias.astype(EXPECTED_DTYPE), PACK).reshape(PACKED_M, 1)

    # --- batch tiling --------------------------------------------------------
    tile_p = tile_b // PACK
    if P >= tile_p:
        eff_tile_p = tile_p          # big-batch path: multiple of 128
    else:
        eff_tile_p = P               # tiny batch: one block covering the array
    grid = (pl.cdiv(P, eff_tile_p),)   # ragged last block handled by Pallas

    out_packed = pl.pallas_call(
        _packed_linear_kernel,
        out_shape=jax.ShapeDtypeStruct((PACKED_M, P), EXPECTED_DTYPE),
        grid=grid,
        in_specs=[
            # x: one packed batch tile per step (default double-buffering; do
            # NOT raise to Buffered(3) -- spend VMEM on tile size instead).
            pl.BlockSpec((eff_tile_p, PACKED_K), lambda i: (i, 0)),
            # weight / bias: tiny, same resident block every step.
            pl.BlockSpec((PACKED_M, PACKED_K), lambda i: (0, 0)),
            pl.BlockSpec((PACKED_M, 1), lambda i: (0, 0)),
        ],
        out_specs=pl.BlockSpec((PACKED_M, eff_tile_p), lambda i: (0, i)),
        compiler_params=pltpu.CompilerParams(
            # Batch tiles are independent -> megacore sharding on v7x.
            dimension_semantics=("parallel",),
        ),
    )(x_packed, w_pack, b_pack)

    # Unpack: out_packed[2j+o, p] = y[4p+j, o].  Layout plumbing only; stays
    # fused under the same jit as the pallas_call.
    out = (out_packed.reshape(PACK, OUT_FEATURES, P)
           .transpose(2, 0, 1)
           .reshape(P * PACK, OUT_FEATURES))[:B]
    assert out.dtype == EXPECTED_DTYPE
    return out


if __name__ == "__main__":
    key = jax.random.PRNGKey(0)
    kx, kw, kb = jax.random.split(key, 3)

    B = 8  # small batch consistent with Linear(32, 2)
    x = jax.random.normal(kx, (B, IN_FEATURES), dtype=jnp.float32).astype(EXPECTED_DTYPE)

    # nn.Linear-style uniform(-1/sqrt(32), 1/sqrt(32)) init
    bound = 1.0 / (IN_FEATURES ** 0.5)
    weight = jax.random.uniform(kw, (OUT_FEATURES, IN_FEATURES),
                                minval=-bound, maxval=bound, dtype=jnp.float32)
    bias = jax.random.uniform(kb, (OUT_FEATURES,),
                              minval=-bound, maxval=bound, dtype=jnp.float32)

    fwd = jax.jit(mixed_precision_linear)
    out = jax.block_until_ready(fwd(x, weight, bias))

    # Reference in the same precision regime (bf16 params, f32 accumulate, bf16 out).
    w_ref = weight.astype(EXPECTED_DTYPE).astype(jnp.float32)
    b_ref = bias.astype(EXPECTED_DTYPE).astype(jnp.float32)
    ref = (jnp.dot(x.astype(jnp.float32), w_ref.T) + b_ref).astype(EXPECTED_DTYPE)

    assert out.shape == (B, OUT_FEATURES)
    assert out.dtype == EXPECTED_DTYPE
    assert jnp.allclose(out.astype(jnp.float32), ref.astype(jnp.float32),
                        atol=1e-2, rtol=1e-2)

    print("KERNEL_OK")
</pallas_src>

<mosaic_0001>
module attributes {stable_mosaic.version = 11 : i64} {
  func.func @_packed_linear_kernel(%arg0: i32, %arg1: memref<2x128xbf16, #tpu.memory_space<vmem>>, %arg2: memref<8x128xbf16, #tpu.memory_space<vmem>>, %arg3: memref<8x1xbf16, #tpu.memory_space<vmem>>, %arg4: memref<8x2xbf16, #tpu.memory_space<vmem>>) attributes {dimension_semantics = [#tpu.dimension_semantics<parallel>], iteration_bounds = array<i64: 1>, scalar_prefetch = 0 : i64, scratch_operands = 0 : i64, tpu.core_type = #tpu.core_type<tc>, window_params = [{transform_indices = @transform_0, window_bounds = array<i64: 2, 128>}, {pipeline_mode = #tpu.pipeline_mode<synchronous>, transform_indices = @transform_1, window_bounds = array<i64: 8, 128>}, {pipeline_mode = #tpu.pipeline_mode<synchronous>, transform_indices = @transform_2, window_bounds = array<i64: 8, 1>}, {transform_indices = @transform_3, window_bounds = array<i64: 8, 2>}]} {
    %c0 = arith.constant 0 : index
    %c0_0 = arith.constant 0 : index
    %0 = vector.load %arg2[%c0, %c0_0] : memref<8x128xbf16, #tpu.memory_space<vmem>>, vector<8x128xbf16>
    %c0_1 = arith.constant 0 : index
    %c0_2 = arith.constant 0 : index
    %1 = vector.load %arg1[%c0_1, %c0_2] : memref<2x128xbf16, #tpu.memory_space<vmem>>, vector<2x128xbf16>
    %cst = arith.constant dense<0.000000e+00> : vector<8x2xf32>
    %2 = tpu.matmul %0, %1, %cst {dimension_numbers = #tpu.dot_dimension_numbers<[1], [1], [0], [0], [0, 0, 1, 0], [], []>} : vector<8x128xbf16>, vector<2x128xbf16>, vector<8x2xf32> -> vector<8x2xf32>
    %c0_3 = arith.constant 0 : index
    %c0_4 = arith.constant 0 : index
    %3 = vector.load %arg3[%c0_3, %c0_4] : memref<8x1xbf16, #tpu.memory_space<vmem>>, vector<8x1xbf16>
    %4 = arith.extf %3 : vector<8x1xbf16> to vector<8x1xf32>
    %5 = vector.broadcast %4 : vector<8x1xf32> to vector<8x2xf32>
    %6 = arith.addf %2, %5 : vector<8x2xf32>
    %7 = arith.truncf %6 : vector<8x2xf32> to vector<8x2xbf16>
    %c0_5 = arith.constant 0 : index
    %c0_6 = arith.constant 0 : index
    %8 = vector.load %arg4[%c0_5, %c0_6] : memref<8x2xbf16, #tpu.memory_space<vmem>>, vector<8x2xbf16>
    tpu.vector_store %arg4[%c0_5, %c0_6], %7 {strides = array<i32>} : memref<8x2xbf16, #tpu.memory_space<vmem>>, vector<8x2xbf16>,
    return
  }
  func.func @transform_0(%arg0: i32) -> (i32, i32) {
    %c0_i32 = arith.constant 0 : i32
    %c0_i32_0 = arith.constant 0 : i32
    return %arg0, %c0_i32 : i32, i32
  }
  func.func @transform_1(%arg0: i32) -> (i32, i32) {
    %c0_i32 = arith.constant 0 : i32
    %c0_i32_0 = arith.constant 0 : i32
    %c0_i32_1 = arith.constant 0 : i32
    return %c0_i32, %c0_i32_0 : i32, i32
  }
  func.func @transform_2(%arg0: i32) -> (i32, i32) {
    %c0_i32 = arith.constant 0 : i32
    %c0_i32_0 = arith.constant 0 : i32
    %c0_i32_1 = arith.constant 0 : i32
    return %c0_i32, %c0_i32_0 : i32, i32
  }
  func.func @transform_3(%arg0: i32) -> (i32, i32) {
    %c0_i32 = arith.constant 0 : i32
    %c0_i32_0 = arith.constant 0 : i32
    return %c0_i32, %arg0 : i32, i32
  }
}

</mosaic_0001>

<bundles_post_ra>
// kernel: tile.8
= control target key start
LH: loop header
LB: loop body
LE: loop exit
PB: predicated region body
PF: predicated region fallthrough
CT: control target
= control target key end

     0   :  { %v12_v2 = vmov 0.0   ;;  %s29_s0 = inlined_call_operand.vmem [shape: bf16[2], index: 0, kind: input, shape index: {}]   ;;  %s30_s1 = inlined_call_operand.vmem [shape: bf16[4,2], index: 1, kind: output, shape index: {}]  }
   0x1   :  { %v4_v0 = vld [vmem:[%s29_s0] ss:$0 sm:$0xff] }
   0x2   :  { %v5_v1 = vunpack.i.l.bf16 %v4_v0 }
   0x4   :  { %v9_v3 = vpack.c.bf16 %v12_v2, %v5_v1 }
   0x6   :  { %10 = vst [vmem:[%s30_s1] sm:$0x3] %v9_v3 }

// kernel: tile.0
= control target key start
LH: loop header
LB: loop body
LE: loop exit
PB: predicated region body
PF: predicated region fallthrough
CT: control target
= control target key end

     0   :  { %vm20_vm0 = vcmask 7168   ;;  %v41_v6 = vmov 0.0   ;;  %s58_s0 = inlined_call_operand.vmem [shape: bf16[4,2], index: 0, kind: input, shape index: {}]   ;;  %s59_s1 = inlined_call_operand.vmem [shape: bf16[8,1], index: 1, kind: output, shape index: {}]  }
   0x1   :  { %v15_v0 = vld [vmem:[%s58_s0] sm:$0x3]  ;;  %s40_s0 = smov 127  }
   0x2   :  { %v16_v1 = vunpack.c.l.bf16 %v15_v0 }
   0x4   :  { %18 = vst [vmem:[#allocation1] sm:$0xf] %v16_v1 }
   0xb   :  { %v22_v2 = vld [vmem:[#allocation1] sm:$0xf]  }
   0xc   :  { %v19_v3 = vld [vmem:[#allocation1] sm:$0xf]   ;;  %23 = vrot.lane.b32.xlu0 %v22_v2, %s40_s0 }
   0xd   :  { %21 = vst.msk [vmem:[#allocation0] ss:$2 sm:$0xf] %vm20_vm0, %v19_v3  }
  0x7e   :  { %v24_v4 = vpop.permute.xlu0 %23  }
  0x7f   :  { %27 = vst.msk [vmem:[#allocation0 + $0x1] ss:$2 sm:$0xf] %vm20_vm0, %v24_v4  }
  0x86   :  { %v33_v5 = vld [vmem:[#allocation0] sm:$0xff] }
  0x87   :  { %v34_v7 = vpack.c.bf16 %v41_v6, %v33_v5 }
  0x89   :  { %37 = vst [vmem:[%s59_s1] sm:$0xf] %v34_v7 }

// kernel: mixed_precision_linear.1
= control target key start
LH: loop header
LB: loop body
LE: loop exit
PB: predicated region body
PF: predicated region fallthrough
CT: control target
= control target key end

     0   :  { %v83_v0 = vmov 0.0   ;;  %vm84_vm0 = vmmov 0   ;;  %v85_v3 = vmov 0   ;;  %vm65_vm1 = vcmask 11264   ;;  %s118_s0 = inlined_call_operand.vmem [shape: bf16[2,128], index: 0, kind: input, shape index: {}]   ;;  %s119_s2 = inlined_call_operand.vmem [shape: bf16[8,1], index: 2, kind: input, shape index: {}]   ;;  %s120_s1 = inlined_call_operand.vmem [shape: bf16[8,128], index: 1, kind: input, shape index: {}]   ;;  %s121_s3 = inlined_call_operand.vmem [shape: bf16[8,2], index: 3, kind: output, shape index: {}]  }
   0x1   :  { %73 = vmatprep.subr.bf16.mxu0 %v83_v0  ;;  %v16_v1 = vld [vmem:[%s118_s0] sm:$0x1]  ;;  %75 = vmatprep.mubr.msk.bf16.mxu0 %vm84_vm0, %v83_v0 }
   0x2   :  { %v17_v2 = vld [vmem:[%s119_s2] sm:$0xf]  ;;  %74 = vmatpush3.bf16.xpose.msra.mxu0 %v16_v1  ;;  %82 = vset.pattern.permute.xlu0 %v85_v3 }
   0x3   :  { %v18_v4 = vunpack.c.l.bf16 %v17_v2  ;;  %v15_v5 = vld [vmem:[%s120_s1] sm:$0xf] }
   0x5   :  { %21 = vperm.xlu0 %82, %v18_v4  }
   0x9   :  { %76 = vmatmul.mubr.bf16.vlgmr.msra.gmra.mxu0 %v15_v5 }
  0x80   :  { %v22_v6 = vpop.permute.xlu0 %21 }
  0xc9   :  { %v58_v7 = vpop.f32.mrf.mxu0 }
  0xca   :  { %v59_v8 = vadd.f32 %v58_v7, %v22_v6 }
  0xcb   :  { %v77_v9 = vpop.f32.mrf.mxu0 }
  0xcc   :  { %v64_v10 = vpack.c.bf16 %v59_v8, %v59_v8 }
  0xcd   :  { %v61_v11 = vpop.f32.mrf.mxu0 }
  0xce   :  { %66 = vst.msk [vmem:[%s121_s3] sm:$0xf] %vm65_vm1, %v64_v10 }
  0xcf   :  { %v78_v12 = vpop.f32.mrf.mxu0 }

</bundles_post_ra>
